<compile_context>
chip_gen: v7x
topology: tpu7x:2x2x1
jax: 0.10.0
libtpu: 0.0.40
codegen_flags: <defaults>
</compile_context>

<pallas_src>
import jax
import jax.numpy as jnp
from jax.experimental import pallas as pl
from jax.experimental.pallas import tpu as pltpu


def _merge_kernel(x_ref, w_ref, b_ref, o_ref):
    # x_ref: (Cin, TS)   input tile, spatial on lanes (lane-dense)
    # w_ref: (Cout, Cin) full weight matrix (resident every grid step)
    # b_ref: (Cout, 1)   bias column
    # o_ref: (Cout, TS)  output tile, spatial on lanes (unmasked stores)
    x = x_ref[...]
    cin = x.shape[0]
    acc = jnp.zeros(o_ref.shape, jnp.float32)
    # Tiny static contraction (Cin ~ 4): unrolled VPU multiply-adds, exact f32.
    for c in range(cin):
        acc = acc + w_ref[:, c:c + 1] * x[c:c + 1, :]
    o_ref[...] = (acc + b_ref[...]).astype(o_ref.dtype)


def merge_forward(x_nchw, weight, bias, *, ts=2048):
    """1x1 conv (Merge module) via a channel-major Pallas kernel.

    x_nchw : (N, Cin, H, W) float32
    weight : (Cout, Cin)    float32   (nn.Conv2d weight squeezed over the 1x1 kernel)
    bias   : (Cout,)        float32
    returns: (N, Cout, H, W) float32
    """
    N, Cin, H, W = x_nchw.shape
    Cout = weight.shape[0]
    HW = H * W

    # Free reshape: keep channel-major layout, spatial flattened on the fast axis.
    x = x_nchw.reshape(N, Cin, HW)
    b_col = bias.reshape(Cout, 1)

    # Spatial tile: either the full spatial extent (always legal) or a large
    # multiple of 128 so stores are unmasked; Pallas masks the boundary block.
    if HW <= ts:
        ts_eff = HW
    else:
        ts_eff = max(128, (ts // 128) * 128)

    grid = (N, pl.cdiv(HW, ts_eff))

    out = pl.pallas_call(
        _merge_kernel,
        out_shape=jax.ShapeDtypeStruct((N, Cout, HW), x_nchw.dtype),
        grid_spec=pl.GridSpec(
            grid=grid,
            in_specs=[
                pl.BlockSpec((None, Cin, ts_eff), lambda n, s: (n, 0, s)),
                pl.BlockSpec((Cout, Cin), lambda n, s: (0, 0)),
                pl.BlockSpec((Cout, 1), lambda n, s: (0, 0)),
            ],
            out_specs=pl.BlockSpec((None, Cout, ts_eff), lambda n, s: (n, 0, s)),
        ),
        compiler_params=pltpu.CompilerParams(
            dimension_semantics=("parallel", "parallel")),
    )(x, weight, b_col)

    # Free reshape back to NCHW (no transpose needed).
    return out.reshape(N, Cout, H, W)


if __name__ == "__main__":
    # Small shapes consistent with Merge(x_dim, y_dim) on an NCHW feature map.
    N, Cin, Cout, H, W = 2, 4, 8, 16, 16

    key = jax.random.PRNGKey(0)
    kx, kw, kb = jax.random.split(key, 3)

    x = jax.random.normal(kx, (N, Cin, H, W), dtype=jnp.float32)
    # Deterministic synthetic parameters (no checkpoint load).
    weight = jax.random.normal(kw, (Cout, Cin), dtype=jnp.float32) * 0.1
    bias = jax.random.normal(kb, (Cout,), dtype=jnp.float32) * 0.1

    y = merge_forward(x, weight, bias)
    y = jax.block_until_ready(y)

    # Exact-f32 elementwise reference (avoids MXU default-precision ambiguity).
    y_ref = (x[:, None, :, :, :] * weight[None, :, :, None, None]).sum(axis=2) \
            + bias[None, :, None, None]

    assert y.shape == (N, Cout, H, W)
    assert jnp.allclose(y, y_ref, atol=1e-5, rtol=1e-5)

    print("KERNEL_OK")
</pallas_src>

<mosaic_0001>
module attributes {stable_mosaic.version = 11 : i64} {
  func.func @_merge_kernel(%arg0: i32, %arg1: i32, %arg2: memref<1x4x256xf32, #tpu.memory_space<vmem>>, %arg3: memref<8x4xf32, #tpu.memory_space<vmem>>, %arg4: memref<8x1xf32, #tpu.memory_space<vmem>>, %arg5: memref<1x8x256xf32, #tpu.memory_space<vmem>>) attributes {dimension_semantics = [#tpu.dimension_semantics<parallel>, #tpu.dimension_semantics<parallel>], iteration_bounds = array<i64: 2, 1>, scalar_prefetch = 0 : i64, scratch_operands = 0 : i64, tpu.core_type = #tpu.core_type<tc>, window_params = [{transform_indices = @transform_0, window_bounds = array<i64: 1, 4, 256>}, {pipeline_mode = #tpu.pipeline_mode<synchronous>, transform_indices = @transform_1, window_bounds = array<i64: 8, 4>}, {pipeline_mode = #tpu.pipeline_mode<synchronous>, transform_indices = @transform_2, window_bounds = array<i64: 8, 1>}, {transform_indices = @transform_3, window_bounds = array<i64: 1, 8, 256>}]} {
    %c0 = arith.constant 0 : index
    %c0_0 = arith.constant 0 : index
    %c0_1 = arith.constant 0 : index
    %0 = vector.load %arg2[%c0, %c0_0, %c0_1] : memref<1x4x256xf32, #tpu.memory_space<vmem>>, vector<1x4x256xf32>
    %1 = vector.shape_cast %0 : vector<1x4x256xf32> to vector<4x256xf32>
    %cst = arith.constant 0.000000e+00 : f32
    %2 = vector.broadcast %cst : f32 to vector<8x256xf32>
    %c0_2 = arith.constant 0 : index
    %c0_3 = arith.constant 0 : index
    %3 = vector.load %arg3[%c0_2, %c0_3] : memref<8x4xf32, #tpu.memory_space<vmem>>, vector<8x1xf32>
    %4 = vector.extract_strided_slice %1 {offsets = [0, 0], sizes = [1, 256], strides = [1, 1]} : vector<4x256xf32> to vector<1x256xf32>
    %5 = vector.broadcast %3 : vector<8x1xf32> to vector<8x256xf32>
    %6 = vector.broadcast %4 : vector<1x256xf32> to vector<8x256xf32>
    %7 = arith.mulf %5, %6 : vector<8x256xf32>
    %8 = arith.addf %2, %7 : vector<8x256xf32>
    %c0_4 = arith.constant 0 : index
    %c1 = arith.constant 1 : index
    %9 = vector.load %arg3[%c0_4, %c1] : memref<8x4xf32, #tpu.memory_space<vmem>>, vector<8x1xf32>
    %10 = vector.extract_strided_slice %1 {offsets = [1, 0], sizes = [1, 256], strides = [1, 1]} : vector<4x256xf32> to vector<1x256xf32>
    %11 = vector.broadcast %9 : vector<8x1xf32> to vector<8x256xf32>
    %12 = vector.broadcast %10 : vector<1x256xf32> to vector<8x256xf32>
    %13 = arith.mulf %11, %12 : vector<8x256xf32>
    %14 = arith.addf %8, %13 : vector<8x256xf32>
    %c0_5 = arith.constant 0 : index
    %c2 = arith.constant 2 : index
    %15 = vector.load %arg3[%c0_5, %c2] : memref<8x4xf32, #tpu.memory_space<vmem>>, vector<8x1xf32>
    %16 = vector.extract_strided_slice %1 {offsets = [2, 0], sizes = [1, 256], strides = [1, 1]} : vector<4x256xf32> to vector<1x256xf32>
    %17 = vector.broadcast %15 : vector<8x1xf32> to vector<8x256xf32>
    %18 = vector.broadcast %16 : vector<1x256xf32> to vector<8x256xf32>
    %19 = arith.mulf %17, %18 : vector<8x256xf32>
    %20 = arith.addf %14, %19 : vector<8x256xf32>
    %c0_6 = arith.constant 0 : index
    %c3 = arith.constant 3 : index
    %21 = vector.load %arg3[%c0_6, %c3] : memref<8x4xf32, #tpu.memory_space<vmem>>, vector<8x1xf32>
    %22 = vector.extract_strided_slice %1 {offsets = [3, 0], sizes = [1, 256], strides = [1, 1]} : vector<4x256xf32> to vector<1x256xf32>
    %23 = vector.broadcast %21 : vector<8x1xf32> to vector<8x256xf32>
    %24 = vector.broadcast %22 : vector<1x256xf32> to vector<8x256xf32>
    %25 = arith.mulf %23, %24 : vector<8x256xf32>
    %26 = arith.addf %20, %25 : vector<8x256xf32>
    %c0_7 = arith.constant 0 : index
    %c0_8 = arith.constant 0 : index
    %27 = vector.load %arg4[%c0_7, %c0_8] : memref<8x1xf32, #tpu.memory_space<vmem>>, vector<8x1xf32>
    %28 = vector.broadcast %27 : vector<8x1xf32> to vector<8x256xf32>
    %29 = arith.addf %26, %28 : vector<8x256xf32>
    %c0_9 = arith.constant 0 : index
    %c0_10 = arith.constant 0 : index
    %c0_11 = arith.constant 0 : index
    %30 = vector.load %arg5[%c0_9, %c0_10, %c0_11] : memref<1x8x256xf32, #tpu.memory_space<vmem>>, vector<1x8x256xf32>
    %31 = vector.shape_cast %30 : vector<1x8x256xf32> to vector<8x256xf32>
    %32 = vector.shape_cast %29 : vector<8x256xf32> to vector<1x8x256xf32>
    tpu.vector_store %arg5[%c0_9, %c0_10, %c0_11], %32 {strides = array<i32>} : memref<1x8x256xf32, #tpu.memory_space<vmem>>, vector<1x8x256xf32>,
    return
  }
  func.func @transform_0(%arg0: i32, %arg1: i32) -> (i32, i32, i32) {
    %c0_i32 = arith.constant 0 : i32
    %c0_i32_0 = arith.constant 0 : i32
    return %arg0, %c0_i32, %arg1 : i32, i32, i32
  }
  func.func @transform_1(%arg0: i32, %arg1: i32) -> (i32, i32) {
    %c0_i32 = arith.constant 0 : i32
    %c0_i32_0 = arith.constant 0 : i32
    %c0_i32_1 = arith.constant 0 : i32
    return %c0_i32, %c0_i32_0 : i32, i32
  }
  func.func @transform_2(%arg0: i32, %arg1: i32) -> (i32, i32) {
    %c0_i32 = arith.constant 0 : i32
    %c0_i32_0 = arith.constant 0 : i32
    %c0_i32_1 = arith.constant 0 : i32
    return %c0_i32, %c0_i32_0 : i32, i32
  }
  func.func @transform_3(%arg0: i32, %arg1: i32) -> (i32, i32, i32) {
    %c0_i32 = arith.constant 0 : i32
    %c0_i32_0 = arith.constant 0 : i32
    return %arg0, %c0_i32, %arg1 : i32, i32, i32
  }
}

</mosaic_0001>

<bundles_post_ra>
// kernel: tpu_custom_call.1
= control target key start
LH: loop header
LB: loop body
LE: loop exit
PB: predicated region body
PF: predicated region fallthrough
CT: control target
= control target key end

     0   :  { %8 = vsyncpa [#allocation3], 0  ;;  %s718_s0 = inlined_call_operand.vmem [shape: f32[2,4,256], index: 0, kind: input, shape index: {}]   ;;  %s719_s1 = inlined_call_operand.vmem [shape: f32[8,4], index: 1, kind: input, shape index: {}]   ;;  %s720_s2 = inlined_call_operand.vmem [shape: f32[8,1], index: 2, kind: input, shape index: {}]   ;;  %s721_s3 = inlined_call_operand.hbm [shape: f32[2,8,256], index: 3, kind: output, shape index: {}]  }
   0x1   :  { %10 = vsyncpa [#allocation3 + $0x1], 0  ;;  %s596_s12 = smov 0   ;;  %s598_s13 = smov 0  }
   0x2   :  { %s600_s14 = smov 0   ;;  %s602_s15 = smov 0  }
   0x3   :  { %s604_s16 = smov 0   ;;  %s606_s17 = smov 0  }
   0x4 LB: > { %s411_s18 = sadd.s32 4294967295, %s569_s17   ;;  %s412_s19 = sadd.s32 4294967294, %s569_s17   ;;  %s569_s17 = sphi %s606_s17, %s16_s17   ;;  %s565_s16 = sphi %s604_s16, %s728_s16   ;;  %s561_s15 = sphi %s602_s15, %s727_s15   ;;  %s557_s14 = sphi %s600_s14, %s726_s14   ;;  %s553_s13 = sphi %s598_s13, %s725_s13   ;;  %s549_s12 = sphi %s596_s12, %s724_s12  }
   0x5   : > { %s28_s20 = sadd.s32 1, %s565_s16  ;;  %s107_s21 = sadd.s32 1, %s557_s14 }
   0x6   : > { %p30_p0 = scmp.ge.s32.totalorder %s28_s20, 2  ;;  %p117_p1 = scmp.ne.s32.totalorder %s557_s14, %s553_s13 }
   0x7   : > { %p118_p2 = scmp.eq.s32.totalorder %s411_s18, 1  ;;  %p123_p3 = scmp.ne.s32.totalorder %s553_s13, %s549_s12 }
   0x8   : > { %s730_s20 = smov (%p30_p0, %s28_s20), 0  ;;  %p124_p5 = scmp.eq.s32.totalorder %s412_s19, 1 }
   0x9   : > { %p636_p4 = por %p118_p2, %p117_p1  ;;  %s102_s23 = ssub.s32 %s565_s16, %s730_s20 }
   0xa   : > { %p415_p6 = scmp.ge.s32.totalorder %s569_s17, 1  ;;  %p105_p7 = scmp.eq.s32.totalorder %s102_s23, 0 }
   0xb   : > { %p643_p8 = por %p124_p5, %p123_p3  ;;  %p161_p9 = scmp.lt.s32.totalorder %s569_s17, 3 }
   0xc   : > { %s649_s25 = scalar_select %p105_p7, %s557_s14, %s107_s21  }
   0xd   : > { %p162_p10 = pnand %p415_p6, %p161_p9 }
   0xe   : > { %v201_v0 = vld [vmem:[%s719_s1] sm:$0xff] (!%p162_p10)  ;;  %v571_v1 = vmov (!%p162_p10), 0   ;;  %v572_v2 = vmov (!%p162_p10), 2   ;;  %v573_v3 = vmov (!%p162_p10), 1   ;;  %v574_v4 = vmov (!%p162_p10), 3   ;;  %p190_p11 = scmp.lt.s32.totalorder (!%p162_p10), %s561_s15, 1 }
   0xf   : > { %165 = sbr.rel (%p162_p10) target bundleno = 173 (0xad), region = 32  ;;  %485 = vset.pattern.permute.xlu0 (!%p162_p10), %v571_v1  ;;  %487 = vset.pattern.permute.xlu1 (!%p162_p10), %v572_v2  ;;  %v308_v5 = vld [vmem:[%s720_s2] sm:$0xff] (!%p162_p10)  ;;  %v208_v6 = vlaneseq (!%p162_p10)  ;;  %s186_s8 = sand.u32 (!%p162_p10), 1, %s553_s13  }
  0x10   : > { %204 = vperm.xlu0 (!%p162_p10), %485, %v201_v0   ;;  %257 = vperm.xlu1 (!%p162_p10), %487, %v201_v0   ;;  %s416_s9 = sshll.u32 (!%p162_p10), %s186_s8, 4  ;;  %s425_s10 = sshll.u32 (!%p162_p10), %s561_s15, 8 }
  0x11   : > { %v209_v7 = vshrl.u32 (!%p162_p10), %v208_v6, 7  ;;  %s188_s11 = scalar_lea.vmem (!%p162_p10), [#allocation2], %s416_s9  ;;  %s669_s23 = scalar_lea.hbm (!%p162_p10), %s721_s3, %s425_s10 }
  0x12   : > { %s335_s18 = sshll.u32 (!%p162_p10), %s188_s11, 4  ;;  %s575_s27 = smov (!%p162_p10), [#allocation2]   ;;  %s671_s18 = int_to_ptr.vmem [resolvable:$true] %s335_s18 }
  0x13   : > { %v210_v8 = vsub.s32 (!%p162_p10), 0, %v209_v7  ;;  %v214_v9 = vsub.s32 (!%p162_p10), 4, %v209_v7  ;;  %v236_v10 = vsub.s32 (!%p162_p10), 1, %v209_v7  ;;  %v240_v11 = vsub.s32 (!%p162_p10), 5, %v209_v7  ;;  %s491_s26 = scalar_lea.vmem (!%p162_p10), %s671_s18, 256  ;;  %s495_s28 = sshll.u32 (!%p162_p10), %s575_s27, 4  ;;  %s496_s28 = int_to_ptr.vmem [resolvable:$false] %s495_s28 }
  0x14   : > { %486 = vset.pattern.permute.xlu0 (!%p162_p10), %v573_v3  ;;  %488 = vset.pattern.permute.xlu1 (!%p162_p10), %v574_v4  ;;  %v262_v13 = vsub.s32 (!%p162_p10), 2, %v209_v7  ;;  %v266_v14 = vsub.s32 (!%p162_p10), 6, %v209_v7  ;;  %v288_v15 = vsub.s32 (!%p162_p10), 3, %v209_v7  ;;  %v292_v16 = vsub.s32 (!%p162_p10), 7, %v209_v7  ;;  %p492_p12 = scmp.ne.s32.totalorder (!%p162_p10), %s671_s18, %s491_s26  ;;  %s497_s29 = scalar_lea.vmem (!%p162_p10), %s496_s28, 512 }
  0x15   : > { %231 = vperm.xlu0 (!%p162_p10), %486, %v201_v0   ;;  %283 = vperm.xlu1 (!%p162_p10), %488, %v201_v0   ;;  %p498_p1 = scmp.lt.s32.totalorder (!%p162_p10), %s671_s18, %s496_s28  ;;  %p499_p2 = scmp.lt.s32.totalorder (!%p162_p10), %s497_s29, %s491_s26 }
  0x16   : > { %s191_s30 = scalar_select %p190_p11, %s561_s15, 1 }
  0x17   : > { %s319_s15 = scalar_lea.sflag [#allocation3], %s186_s8  ;;  %p493_p13 = pnand %p492_p12, %p636_p4 }
  0x18   : > { %s424_s4 = sshll.u32 %s191_s30, 3  ;;  %p500_p3 = por %p499_p2, %p498_p1 }
  0x19   : > { %489 = vset.pattern.permute.xlu1 %v571_v1  ;;  %490 = vset.pattern.permute.xlu0 %v571_v1  ;;  %s197_s7 = scalar_lea.vmem %s718_s0, %s424_s4  ;;  %p494_p0 = pneg %p493_p13 }
  0x1a   : > { %311 = vperm.xlu1 %489, %v308_v5   ;;  %v200_v12 = vld [vmem:[%s197_s7] sm:$0xff] }
  0x1b   : > { %v211_v17 = vrot.slane %v200_v12, %v210_v8  ;;  %v215_v18 = vrot.slane %v200_v12, %v214_v9  ;;  %v237_v19 = vrot.slane %v200_v12, %v236_v10  ;;  %v241_v20 = vrot.slane %v200_v12, %v240_v11  ;;  %p501_p5 = pnand %p500_p3, %p494_p0 }
  0x1c   : > { %v263_v21 = vrot.slane %v200_v12, %v262_v13  ;;  %v267_v22 = vrot.slane %v200_v12, %v266_v14  ;;  %v289_v25 = vrot.slane %v200_v12, %v288_v15  ;;  %v293_v26 = vrot.slane %v200_v12, %v292_v16 }
  0x1d   : > { %v221_v27 = vrot.slane %v211_v17, %v210_v8  ;;  %v225_v28 = vrot.slane %v215_v18, %v210_v8  ;;  %v247_v29 = vrot.slane %v237_v19, %v236_v10  ;;  %v251_v30 = vrot.slane %v241_v20, %v236_v10 }
  0x1e   : > { %v273_v31 = vrot.slane %v263_v21, %v262_v13  ;;  %v277_v32 = vrot.slane %v267_v22, %v262_v13  ;;  %v299_v33 = vrot.slane %v289_v25, %v288_v15  ;;  %v303_v34 = vrot.slane %v293_v26, %v288_v15 }
  0x8f   : > { %v205_v23 = vpop.permute.xlu0 %204  ;;  %v258_v24 = vpop.permute.xlu1 %257 }
  0x90   : > { %v226_v37 = vmul.f32 %v221_v27, %v205_v23  ;;  %v227_v38 = vmul.f32 %v225_v28, %v205_v23  ;;  %v278_v41 = vmul.f32 %v273_v31, %v258_v24  ;;  %v279_v42 = vmul.f32 %v277_v32, %v258_v24 }
  0x94   : > { %v232_v35 = vpop.permute.xlu0 %231  ;;  %v284_v36 = vpop.permute.xlu1 %283 }
  0x95   : > { %v252_v39 = vmul.f32 %v247_v29, %v232_v35  ;;  %v253_v40 = vmul.f32 %v251_v30, %v232_v35  ;;  %v304_v45 = vmul.f32 %v299_v33, %v284_v36  ;;  %v305_v46 = vmul.f32 %v303_v34, %v284_v36 }
  0x97   : > { %v254_v43 = vadd.f32 %v252_v39, %v226_v37  ;;  %v255_v44 = vadd.f32 %v253_v40, %v227_v38 }
  0x99   : > { %v280_v47 = vadd.f32 %v278_v41, %v254_v43  ;;  %v281_v48 = vadd.f32 %v279_v42, %v255_v44  ;;  %v312_v49 = vpop.permute.xlu1 %311 }
  0x9b   : > { %v306_v50 = vadd.f32 %v304_v45, %v280_v47  ;;  %v307_v51 = vadd.f32 %v305_v46, %v281_v48 }
  0x9d   : > { %v314_v52 = vadd.f32 %v312_v49, %v306_v50  ;;  %v315_v53 = vadd.f32 %v312_v49, %v307_v51 }
  0x9f   : > { %316 = vst [vmem:[%s188_s11] sm:$0xff] %v314_v52  ;;  %317 = vst [vmem:[%s188_s11 + $0x8] sm:$0xff] %v315_v53 }
  0xa0   : > { %504 = shalt.err (!%p501_p5)
}
  0xa1   : > { %s505_s30 = scalar_lea.hbm %s669_s23, 256  ;;  %s509_s6 = scalar_lea.hbm %s721_s3, 512 }
  0xa2   : > { %p506_p6 = scmp.ne.s32.totalorder %s669_s23, %s505_s30  ;;  %p510_p10 = scmp.lt.u32.totalorder %s669_s23, %s721_s3 }
  0xa3   : > { %p511_p11 = scmp.lt.u32.totalorder %s509_s6, %s505_s30  ;;  %p513_p13 = scmp.lt.u32.totalorder %s505_s30, %s669_s23 }
  0xa4   : > { %p507_p7 = pnand %p506_p6, %p636_p4 }
  0xa5   : > { %p512_p12 = por %p511_p11, %p510_p10 }
  0xa6   : > { %p508_p9 = pneg %p507_p7 }
  0xa7   : > { %p514_p0 = por %p513_p13, %p512_p12 }
  0xa9   : > { %p515_p1 = pnand %p514_p0, %p508_p9 }
  0xab   : > { %518 = shalt.err (!%p515_p1)
}
  0xac   : > { %426 = dma.vmem_to_hbm [thread:$0]  (%p636_p4), %s671_s18, 256, %s669_s23, %s319_s15  }
  0xad PF: > { %p432_p2 = scmp.ge.s32.totalorder %s569_s17, 2  ;;  %s347_s9 = sand.u32 1, %s549_s12  }
  0xae   : > { %s348_s10 = scalar_lea.sflag [#allocation3], %s347_s9 }
  0xaf   : > { %p429_p3 = pnand %p432_p2, %p643_p8 }
  0xb1   : > { %544 = dma.done.wait (!%p429_p3), %s348_s10, 256  }
  0xb2   : > { %546 = vsyncadd (!%p429_p3), %s348_s10, 4294967040  ;;  %s16_s17 = sadd.s32 1, %s569_s17   ;;  %s724_s12 = smov %s553_s13 }
  0xb3   : > { %p13_p5 = scmp.ge.s32.totalorder %s16_s17, 4   ;;  %s725_s13 = smov %s557_s14 }
  0xb4   : > { %s726_s14 = smov %s649_s25  ;;  %s727_s15 = smov %s565_s16 }
  0xb5   : > { %s728_s16 = smov %s730_s20  ;;  %15 = sbr.rel (!%p13_p5) target bundleno = 4 (0x4), region = 67 }
  0xbc   :  { %353 = vsyncpa [#allocation3], 1 }
  0xbd   :  { %355 = vsyncpa [#allocation3 + $0x1], 1 }

</bundles_post_ra>
